<compile_context>
chip_gen: v7x
topology: tpu7x:2x2x1
jax: 0.10.0
libtpu: 0.0.40
codegen_flags: <defaults>
</compile_context>

<pallas_src>
import jax
import jax.numpy as jnp
from jax.experimental import pallas as pl
from jax.experimental.pallas import tpu as pltpu


def gcn_kernel(edge_ref, x_ref, w_ref, out_ref):
    # Project features first (dim_out <= dim_in):
    #   (N, dim_in) @ (dim_in, dim_out) -> (N, dim_out)        (MXU, cheap)
    xw = jnp.dot(x_ref[...], w_ref[...], preferred_element_type=jnp.float32)

    edge = edge_ref[...]                                   # (TM, N) row tile
    # Row sums of the *unnormalized* adjacency tile (XLU lane reduce).
    row_sum = jnp.sum(edge, axis=1, keepdims=True)         # (TM, 1)

    # Aggregate with the unnormalized adjacency, then normalize the result:
    #   D^-1 (E @ M) == (D^-1 E) @ M
    h = jnp.dot(edge, xw, preferred_element_type=jnp.float32)   # (TM, dim_out)
    h = h * pl.reciprocal(row_sum)   # exact reciprocal (approx may miss 1e-5)

    out_ref[...] = jnp.maximum(h, 0.0).astype(out_ref.dtype)


def _pick_row_tile(n, preferred):
    """Largest row tile (multiple of 8, f32 sublane) dividing N, capped at `preferred`."""
    for cand in (preferred, 512, 256, 128, 64, 32, 16, 8):
        if cand <= n and n % cand == 0:
            return cand
    return n  # fall back to full extent (always legal as a block dim)


def gcn_forward(edge, x, w_t, *, block_rows=128):
    """edge: (N, N), x: (N, dim_in), w_t: (dim_in, dim_out) -> (N, dim_out)."""
    n, dim_in = x.shape
    dim_out = w_t.shape[1]
    assert edge.shape == (n, n)

    tm = _pick_row_tile(n, block_rows)
    grid = (n // tm,)

    return pl.pallas_call(
        gcn_kernel,
        out_shape=jax.ShapeDtypeStruct((n, dim_out), x.dtype),
        grid_spec=pl.GridSpec(
            grid=grid,
            in_specs=[
                # Row tile of Edge; N stays full-extent (reduction axis in-tile).
                pl.BlockSpec((tm, n), lambda i: (i, 0)),
                # X and W_t are small: keep resident (full-extent blocks;
                # dim_in/dim_out are not (8,128)-multiples so they must be full).
                pl.BlockSpec((n, dim_in), lambda i: (0, 0)),
                pl.BlockSpec((dim_in, dim_out), lambda i: (0, 0)),
            ],
            out_specs=pl.BlockSpec((tm, dim_out), lambda i: (i, 0)),
        ),
        compiler_params=pltpu.CompilerParams(
            # Row tiles are independent -> shard across TensorCores on v7x.
            dimension_semantics=("parallel",),
            # Explicit scoped-VMEM budget with plenty of headroom for the
            # double-buffered Edge tile + resident X/W (safe on v5e/v6e/v7x).
            vmem_limit_bytes=32 * 1024 * 1024,
        ),
    )(edge, x, w_t)


def gcn_reference(edge, x, w_t):
    edge_norm = edge / jnp.sum(edge, axis=1, keepdims=True)
    return jax.nn.relu(edge_norm @ x @ w_t)


if __name__ == "__main__":
    # Batch of graph rows big enough to exercise the row tiling (grid=(2,)),
    # with the module's dim_in -> dim_out projection.
    N, DIM_IN, DIM_OUT = 256, 32, 16

    key = jax.random.PRNGKey(0)
    k_edge, k_x, k_w = jax.random.split(key, 3)

    # Strictly positive adjacency so row sums are nonzero (same assumption as
    # the PyTorch reference, which divides by Edge.sum(1)).
    edge = jax.random.uniform(k_edge, (N, N), dtype=jnp.float32,
                              minval=0.1, maxval=1.0)
    x = jax.random.normal(k_x, (N, DIM_IN), dtype=jnp.float32)

    # nn.Linear(dim_in, dim_out, bias=False)-style init, stored pre-transposed.
    bound = 1.0 / jnp.sqrt(jnp.float32(DIM_IN))
    w = jax.random.uniform(k_w, (DIM_OUT, DIM_IN), dtype=jnp.float32,
                           minval=-bound, maxval=bound)
    w_t = w.T  # (DIM_IN, DIM_OUT)

    out = gcn_forward(edge, x, w_t)
    out = jax.block_until_ready(out)

    ref = gcn_reference(edge, x, w_t)
    assert out.shape == (N, DIM_OUT)
    assert jnp.allclose(out, ref, atol=1e-5, rtol=1e-5), "mismatch vs reference"

    print("KERNEL_OK")
</pallas_src>

<mosaic_0001>
module attributes {stable_mosaic.version = 11 : i64} {
  func.func @gcn_kernel(%arg0: i32, %arg1: memref<128x256xf32, #tpu.memory_space<vmem>>, %arg2: memref<256x32xf32, #tpu.memory_space<vmem>>, %arg3: memref<32x16xf32, #tpu.memory_space<vmem>>, %arg4: memref<128x16xf32, #tpu.memory_space<vmem>>) attributes {dimension_semantics = [#tpu.dimension_semantics<parallel>], iteration_bounds = array<i64: 2>, scalar_prefetch = 0 : i64, scratch_operands = 0 : i64, tpu.core_type = #tpu.core_type<tc>, window_params = [{transform_indices = @transform_0, window_bounds = array<i64: 128, 256>}, {pipeline_mode = #tpu.pipeline_mode<synchronous>, transform_indices = @transform_1, window_bounds = array<i64: 256, 32>}, {pipeline_mode = #tpu.pipeline_mode<synchronous>, transform_indices = @transform_2, window_bounds = array<i64: 32, 16>}, {transform_indices = @transform_3, window_bounds = array<i64: 128, 16>}]} {
    %c0 = arith.constant 0 : index
    %c0_0 = arith.constant 0 : index
    %0 = vector.load %arg2[%c0, %c0_0] : memref<256x32xf32, #tpu.memory_space<vmem>>, vector<256x32xf32>
    %c0_1 = arith.constant 0 : index
    %c0_2 = arith.constant 0 : index
    %1 = vector.load %arg3[%c0_1, %c0_2] : memref<32x16xf32, #tpu.memory_space<vmem>>, vector<32x16xf32>
    %cst = arith.constant dense<0.000000e+00> : vector<256x16xf32>
    %2 = tpu.matmul %0, %1, %cst {dimension_numbers = #tpu.dot_dimension_numbers<[1], [0], [0], [1], [0, 0, 1, 1], [], []>} : vector<256x32xf32>, vector<32x16xf32>, vector<256x16xf32> -> vector<256x16xf32>
    %c0_3 = arith.constant 0 : index
    %c0_4 = arith.constant 0 : index
    %3 = vector.load %arg1[%c0_3, %c0_4] : memref<128x256xf32, #tpu.memory_space<vmem>>, vector<128x256xf32>
    %cst_5 = arith.constant dense<0.000000e+00> : vector<128xf32>
    %4 = vector.multi_reduction <add>, %3, %cst_5 [1] : vector<128x256xf32> to vector<128xf32>
    %5 = vector.shape_cast %4 : vector<128xf32> to vector<128x1xf32>
    %cst_6 = arith.constant dense<0.000000e+00> : vector<128x16xf32>
    %6 = tpu.matmul %3, %2, %cst_6 {dimension_numbers = #tpu.dot_dimension_numbers<[1], [0], [0], [1], [0, 0, 1, 1], [], []>} : vector<128x256xf32>, vector<256x16xf32>, vector<128x16xf32> -> vector<128x16xf32>
    %7 = tpu.reciprocal %5 : vector<128x1xf32> -> vector<128x1xf32>
    %8 = vector.broadcast %7 : vector<128x1xf32> to vector<128x16xf32>
    %9 = arith.mulf %6, %8 : vector<128x16xf32>
    %cst_7 = arith.constant 0.000000e+00 : f32
    %10 = vector.broadcast %cst_7 : f32 to vector<128x16xf32>
    %11 = arith.maximumf %9, %10 : vector<128x16xf32>
    %c0_8 = arith.constant 0 : index
    %c0_9 = arith.constant 0 : index
    %12 = vector.load %arg4[%c0_8, %c0_9] : memref<128x16xf32, #tpu.memory_space<vmem>>, vector<128x16xf32>
    tpu.vector_store %arg4[%c0_8, %c0_9], %11 {strides = array<i32>} : memref<128x16xf32, #tpu.memory_space<vmem>>, vector<128x16xf32>,
    return
  }
  func.func @transform_0(%arg0: i32) -> (i32, i32) {
    %c0_i32 = arith.constant 0 : i32
    %c0_i32_0 = arith.constant 0 : i32
    return %arg0, %c0_i32 : i32, i32
  }
  func.func @transform_1(%arg0: i32) -> (i32, i32) {
    %c0_i32 = arith.constant 0 : i32
    %c0_i32_0 = arith.constant 0 : i32
    %c0_i32_1 = arith.constant 0 : i32
    return %c0_i32, %c0_i32_0 : i32, i32
  }
  func.func @transform_2(%arg0: i32) -> (i32, i32) {
    %c0_i32 = arith.constant 0 : i32
    %c0_i32_0 = arith.constant 0 : i32
    %c0_i32_1 = arith.constant 0 : i32
    return %c0_i32, %c0_i32_0 : i32, i32
  }
  func.func @transform_3(%arg0: i32) -> (i32, i32) {
    %c0_i32 = arith.constant 0 : i32
    %c0_i32_0 = arith.constant 0 : i32
    return %arg0, %c0_i32 : i32, i32
  }
}

</mosaic_0001>

<bundles_post_ra>
// kernel: tpu_custom_call.1
= control target key start
LH: loop header
LB: loop body
LE: loop exit
PB: predicated region body
PF: predicated region fallthrough
CT: control target
= control target key end

     0   :  { %8 = vsyncpa [#allocation3], 0  ;;  %s1782_s0 = inlined_call_operand.hbm [shape: f32[256,256], index: 0, kind: input, shape index: {}]   ;;  %s1783_s1 = inlined_call_operand.vmem [shape: f32[256,32], index: 1, kind: input, shape index: {}]   ;;  %s1784_s2 = inlined_call_operand.vmem [shape: f32[32,16], index: 2, kind: input, shape index: {}]   ;;  %s1785_s3 = inlined_call_operand.vmem [shape: f32[256,16], index: 3, kind: output, shape index: {}]  }
   0x1   :  { %10 = vsyncpa [#allocation3 + $0x1], 0  ;;  %s1347_s12 = smov 0   ;;  %s1349_s13 = smov 0  }
   0x2   :  { %s1351_s14 = smov 0   ;;  %s1353_s15 = smov 0  }
   0x3 LB: > { %s909_s16 = sadd.s32 4294967295, %s1322_s15   ;;  %s1367_s17 = sadd.s32 1, %s1322_s15   ;;  %s1322_s15 = sphi %s1353_s15, %s1792_s15   ;;  %s1318_s14 = sphi %s1351_s14, %s1791_s14   ;;  %s1314_s13 = sphi %s1349_s13, %s1790_s13   ;;  %s1310_s12 = sphi %s1347_s12, %s1789_s12  }
   0x4   : > { %s20_s18 = ssub.s32 %s1322_s15, %s1367_s17  ;;  %s23_s19 = sadd.s32 1, %s1318_s14 }
   0x5   : > { %p21_p0 = scmp.eq.s32.totalorder %s20_s18, 0  ;;  %p30_p1 = scmp.ne.s32.totalorder %s1318_s14, %s1314_s13 }
   0x6   : > { %p31_p2 = scmp.eq.s32.totalorder %s1322_s15, 0  ;;  %p36_p3 = scmp.ne.s32.totalorder %s1314_s13, %s1310_s12 }
   0x7   : > { %s1377_s20 = scalar_select %p21_p0, %s1318_s14, %s23_s19  }
   0x8   : > { %p32_p4 = por %p31_p2, %p30_p1  ;;  %p37_p5 = scmp.eq.s32.totalorder %s909_s16, 0 }
   0x9   : > { %p1191_p6 = scmp.lt.s32.totalorder %s1322_s15, 2  ;;  %s134_s22 = sand.u32 1, %s1318_s14  }
   0xa   : > { %p1382_p7 = por %p37_p5, %p36_p3  ;;  %s913_s23 = sshll.u32 %s134_s22, 8 }
   0xb   : > { %s956_s24 = sshll.u32 %s1322_s15, 12  ;;  %s138_s28 = scalar_lea.vmem [#allocation2], %s913_s23 }
   0xc   : > { %s1391_s27 = scalar_lea.hbm %s1782_s0, %s956_s24  ;;  %s146_s29 = sshll.u32 %s138_s28, 4  ;;  %s1393_s29 = int_to_ptr.vmem [resolvable:$true] %s146_s29 }
   0xd   : > { %p1395_p8 = pnand %p1191_p6, %p32_p4  ;;  %s1400_s4 = scalar_lea.sflag [#allocation3], %s134_s22 }
   0xe   : > { %s1258_s5 = scalar_lea.hbm %s1391_s27, 4096  ;;  %s1263_s8 = scalar_lea.hbm %s1782_s0, 8192 }
   0xf   : > { %p1259_p10 = scmp.ne.s32.totalorder %s1391_s27, %s1258_s5  ;;  %p1260_p11 = pneg %p1395_p8 }
  0x10   : > { %p1264_p0 = scmp.lt.u32.totalorder %s1391_s27, %s1782_s0  ;;  %p1265_p1 = scmp.lt.u32.totalorder %s1263_s8, %s1258_s5 }
  0x11   : > { %p1261_p12 = pnand %p1260_p11, %p1259_p10  ;;  %p1267_p3 = scmp.lt.u32.totalorder %s1258_s5, %s1391_s27 }
  0x12   : > { %p1266_p2 = por %p1265_p1, %p1264_p0 }
  0x13   : > { %p1262_p13 = pneg %p1261_p12 }
  0x14   : > { %p1268_p4 = por %p1267_p3, %p1266_p2 }
  0x16   : > { %p1269_p5 = pnand %p1268_p4, %p1262_p13 }
  0x18   : > { %1272 = shalt.err (!%p1269_p5)
}
  0x19   : > { %s1273_s11 = scalar_lea.vmem %s1393_s29, 4096  ;;  %s1324_s12 = smov [#allocation2]  }
  0x1a   : > { %p1274_p6 = scmp.ne.s32.totalorder %s1393_s29, %s1273_s11  ;;  %s1278_s18 = sshll.u32 %s1324_s12, 4  ;;  %s1279_s18 = int_to_ptr.vmem [resolvable:$false] %s1278_s18 }
  0x1b   : > { %s1280_s19 = scalar_lea.vmem %s1279_s18, 8192  ;;  %p1281_p9 = scmp.lt.s32.totalorder %s1393_s29, %s1279_s18 }
  0x1c   : > { %p1276_p10 = pnand %p1274_p6, %p1260_p11  ;;  %p1282_p0 = scmp.lt.s32.totalorder %s1280_s19, %s1273_s11 }
  0x1e   : > { %p1277_p12 = pneg %p1276_p10  ;;  %p1283_p1 = por %p1282_p0, %p1281_p9 }
  0x20   : > { %p1284_p2 = pnand %p1283_p1, %p1277_p12 }
  0x22   : > { %1287 = shalt.err (!%p1284_p2)
}
  0x23   : > { %s1325_s22 = smov 256   ;;  %s1326_s23 = smov 16  }
  0x24   : > { %1190 = dma.hbm_to_vmem [thread:$0]  (!%p1395_p8), %s1391_s27, 4096, %s1393_s29, %s1400_s4, %s1325_s22, %s1325_s22, %s1326_s23  }
  0x25   : > { %p154_p11 = scmp.lt.s32.totalorder %s1322_s15, 3  ;;  %p1788_p13 = scmp.ge.s32.totalorder %s1322_s15, 1 }
  0x27   : > { %p155_p3 = pnand %p1788_p13, %p154_p11 }
  0x28   : > { %s160_s24 = sand.u32 (!%p155_p3), 1, %s1314_s13  }
  0x29   : > { %158 = sbr.rel (%p155_p3) target bundleno = 607 (0x25f), region = 32  ;;  %s918_s25 = sshll.u32 (!%p155_p3), %s160_s24, 8 }
  0x2a   : > { %s161_s26 = scalar_lea.sflag (!%p155_p3), [#allocation3], %s160_s24  ;;  %s1432_s28 = scalar_lea.vmem (!%p155_p3), [#allocation2], %s918_s25 }
  0x30   : > { %1305 = dma.done.wait (%p1382_p7), %s161_s26, 4096  }
  0x31   : > { %1307 = vsyncadd (%p1382_p7), %s161_s26, 4294963200  ;;  %vm230_vm0 = vcmask 261120   ;;  %v226_v0 = vld [vmem:[%s1784_s2] sm:$0xff]  ;;  %v227_v1 = vld [vmem:[%s1784_s2 + $0x8] sm:$0xff]  ;;  %vm825_vm1 = vcmask 130048  }
  0x32   : > { %v228_v2 = vld [vmem:[%s1784_s2 + $0x10] sm:$0xff]  ;;  %v1129_v3 = vpack.c.bf16 %v227_v1, %v226_v0  ;;  %v229_v4 = vld [vmem:[%s1784_s2 + $0x18] sm:$0xff]  ;;  %v194_v5 = vld [vmem:[%s1783_s1] sm:$0xff] }
  0x33   : > { %v1133_v6 = vpack.c.bf16 %v229_v4, %v228_v2  ;;  %1081 = vmatprep.mubr.msk.f32.mxu0 %vm230_vm0, %v194_v5  ;;  %v195_v7 = vld [vmem:[%s1783_s1 + $0x8] sm:$0xff]  ;;  %v196_v8 = vld [vmem:[%s1783_s1 + $0x10] sm:$0xff]  ;;  %v197_v9 = vld [vmem:[%s1783_s1 + $0x18] sm:$0xff] }
  0x34   : > { %1130 = vmatprep.subr.bf16.mxu0 %v1129_v3  ;;  %v198_v10 = vld [vmem:[%s1783_s1 + $0x20] sm:$0xff]  ;;  %v199_v11 = vld [vmem:[%s1783_s1 + $0x28] sm:$0xff]  ;;  %v200_v12 = vld [vmem:[%s1783_s1 + $0x30] sm:$0xff] }
  0x35   : > { %1132 = vmatpush3.bf16.msra.mxu0 %v1129_v3  ;;  %v201_v13 = vld [vmem:[%s1783_s1 + $0x38] sm:$0xff]  ;;  %v202_v14 = vld [vmem:[%s1783_s1 + $0x40] sm:$0xff]  ;;  %v203_v15 = vld [vmem:[%s1783_s1 + $0x48] sm:$0xff] }
  0x36   : > { %1134 = vmatprep.subr.bf16.mxu0 %v1133_v6  ;;  %v204_v16 = vld [vmem:[%s1783_s1 + $0x50] sm:$0xff]  ;;  %v205_v17 = vld [vmem:[%s1783_s1 + $0x58] sm:$0xff]  ;;  %v206_v18 = vld [vmem:[%s1783_s1 + $0x60] sm:$0xff] }
  0x37   : > { %v207_v19 = vld [vmem:[%s1783_s1 + $0x68] sm:$0xff]  ;;  %v208_v20 = vld [vmem:[%s1783_s1 + $0x70] sm:$0xff]  ;;  %v209_v21 = vld [vmem:[%s1783_s1 + $0x78] sm:$0xff] }
  0x38   : > { %v210_v22 = vld [vmem:[%s1783_s1 + $0x80] sm:$0xff]  ;;  %v211_v23 = vld [vmem:[%s1783_s1 + $0x88] sm:$0xff]  ;;  %v212_v24 = vld [vmem:[%s1783_s1 + $0x90] sm:$0xff] }
  0x39   : > { %1136 = vmatpush3.bf16.msra.mxu0 %v1133_v6  ;;  %v213_v25 = vld [vmem:[%s1783_s1 + $0x98] sm:$0xff]  ;;  %v214_v26 = vld [vmem:[%s1783_s1 + $0xa0] sm:$0xff]  ;;  %v215_v27 = vld [vmem:[%s1783_s1 + $0xa8] sm:$0xff] }
  0x3a   : > { %v216_v28 = vld [vmem:[%s1783_s1 + $0xb0] sm:$0xff]  ;;  %v217_v29 = vld [vmem:[%s1783_s1 + $0xb8] sm:$0xff]  ;;  %v218_v30 = vld [vmem:[%s1783_s1 + $0xc0] sm:$0xff] }
  0x3b   : > { %v219_v31 = vld [vmem:[%s1783_s1 + $0xc8] sm:$0xff]  ;;  %v220_v32 = vld [vmem:[%s1783_s1 + $0xd0] sm:$0xff]  ;;  %v221_v33 = vld [vmem:[%s1783_s1 + $0xd8] sm:$0xff] }
  0x3c   : > { %1082 = vmatmul.mubr.msk.f32.vlgmr.msra.gmra.mrb[0].mxu0 %vm230_vm0, %v195_v7  ;;  %v222_v34 = vld [vmem:[%s1783_s1 + $0xe0] sm:$0xff]  ;;  %v223_v35 = vld [vmem:[%s1783_s1 + $0xe8] sm:$0xff]  ;;  %v224_v36 = vld [vmem:[%s1783_s1 + $0xf0] sm:$0xff] }
  0x3d   : > { %1084 = vmatprep.mubr.msk.f32.mxu0 %vm230_vm0, %v196_v8  ;;  %v225_v37 = vld [vmem:[%s1783_s1 + $0xf8] sm:$0xff]  ;;  %v553_v39 = vld [vmem:[%s1432_s28 + $0x8] sm:$0xff]  ;;  %v1581_v40 = vld [vmem:[%s1432_s28] sm:$0xff] }
  0x3e   : > { %v559_v38 = vld [vmem:[%s1432_s28 + $0x38] sm:$0xff]  ;;  %v1584_v41 = vld [vmem:[%s1432_s28 + $0x28] sm:$0xff]  ;;  %v1587_v42 = vld [vmem:[%s1432_s28 + $0x20] sm:$0xff]  ;;  %v584_v44 = vadd.f32 %v553_v39, %v1581_v40 }
  0x3f   : > { %711 = vmatprep.mubr.f32.mxu1 %v559_v38  ;;  %v590_v43 = vadd.f32 %v1584_v41, %v1587_v42  ;;  %v1593_v45 = vld [vmem:[%s1432_s28 + $0x30] sm:$0xff]  ;;  %v1596_v46 = vld [vmem:[%s1432_s28 + $0x18] sm:$0xff]  ;;  %v1605_v50 = vld [vmem:[%s1432_s28 + $0x48] sm:$0xff] }
  0x40   : > { %1085 = vmatmul.mubr.msk.f32.gmra.mrb[2].mxu0 %vm230_vm0, %v197_v9  ;;  %v1599_v47 = vld [vmem:[%s1432_s28 + $0x10] sm:$0xff]  ;;  %585 = vadd.xlane.f32.xlu0 %v584_v44  ;;  %v593_v48 = vadd.f32 %v559_v38, %v1593_v45  ;;  %v1608_v51 = vld [vmem:[%s1432_s28 + $0x40] sm:$0xff]  ;;  %v1611_v52 = vld [vmem:[%s1432_s28 + $0x58] sm:$0xff] }
  0x41   : > { %1087 = vmatprep.mubr.msk.f32.mxu0 %vm230_vm0, %v198_v10  ;;  %591 = vadd.xlane.f32.xlu1 %v590_v43  ;;  %v587_v49 = vadd.f32 %v1596_v46, %v1599_v47  ;;  %v1614_v53 = vld [vmem:[%s1432_s28 + $0x50] sm:$0xff]  ;;  %v596_v54 = vadd.f32 %v1605_v50, %v1608_v51  ;;  %v1621_v56 = vld [vmem:[%s1432_s28 + $0x68] sm:$0xff]  ;;  %v1624_v57 = vld [vmem:[%s1432_s28 + $0x60] sm:$0xff] }
  0x42   : > { %v599_v55 = vadd.f32 %v1611_v52, %v1614_v53  ;;  %v1627_v58 = vld [vmem:[%s1432_s28 + $0x78] sm:$0xff]  ;;  %v1630_v59 = vld [vmem:[%s1432_s28 + $0x70] sm:$0xff]  ;;  %v602_v60 = vadd.f32 %v1621_v56, %v1624_v57  ;;  %v1637_v63 = vld [vmem:[%s1432_s28 + $0x88] sm:$0xff] }
  0x43   : > { %v605_v61 = vadd.f32 %v1627_v58, %v1630_v59  ;;  %v1640_v1 = vld [vmem:[%s1432_s28 + $0x80] sm:$0xff]  ;;  %v1643_v2 = vld [vmem:[%s1432_s28 + $0x98] sm:$0xff]  ;;  %v1646_v3 = vld [vmem:[%s1432_s28 + $0x90] sm:$0xff] }
  0x44   : > { %1088 = vmatmul.mubr.msk.f32.gmra.mrb[4].mxu0 %vm230_vm0, %v199_v11  ;;  %588 = vadd.xlane.f32.xlu0 %v587_v49  ;;  %v608_v5 = vadd.f32 %v1637_v63, %v1640_v1  ;;  %v611_v6 = vadd.f32 %v1643_v2, %v1646_v3  ;;  %v1653_v8 = vld [vmem:[%s1432_s28 + $0xa8] sm:$0xff]  ;;  %v1656_v10 = vld [vmem:[%s1432_s28 + $0xa0] sm:$0xff]  ;;  %v1659_v11 = vld [vmem:[%s1432_s28 + $0xb8] sm:$0xff] }
  0x45   : > { %1090 = vmatprep.mubr.msk.f32.mxu0 %vm230_vm0, %v200_v12  ;;  %594 = vadd.xlane.f32.xlu1 %v593_v48  ;;  %v1662_v12 = vld [vmem:[%s1432_s28 + $0xb0] sm:$0xff] }
  0x48   : > { %1091 = vmatmul.mubr.msk.f32.gmra.mrb[6].mxu0 %vm230_vm0, %v201_v13  ;;  %597 = vadd.xlane.f32.xlu0 %v596_v54 }
  0x49   : > { %1093 = vmatprep.mubr.msk.f32.mxu0 %vm230_vm0, %v202_v14  ;;  %600 = vadd.xlane.f32.xlu1 %v599_v55  ;;  %v614_v14 = vadd.f32 %v1653_v8, %v1656_v10 }
  0x4c   : > { %1094 = vmatmul.mubr.msk.f32.gmra.mrb[8].mxu0 %vm230_vm0, %v203_v15  ;;  %603 = vadd.xlane.f32.xlu0 %v602_v60  ;;  %v617_v15 = vadd.f32 %v1659_v11, %v1662_v12 }
  0x4d   : > { %1096 = vmatprep.mubr.msk.f32.mxu0 %vm230_vm0, %v204_v16  ;;  %606 = vadd.xlane.f32.xlu1 %v605_v61 }
  0x50   : > { %1097 = vmatmul.mubr.msk.f32.gmra.mrb[10].mxu0 %vm230_vm0, %v205_v17  ;;  %609 = vadd.xlane.f32.xlu0 %v608_v5  ;;  %v1669_v17 = vld [vmem:[%s1432_s28 + $0xc8] sm:$0xff] }
  0x51   : > { %1099 = vmatprep.mubr.msk.f32.mxu0 %vm230_vm0, %v206_v18  ;;  %612 = vadd.xlane.f32.xlu1 %v611_v6 }
  0x54   : > { %1100 = vmatmul.mubr.msk.f32.gmra.mrb[12].mxu0 %vm230_vm0, %v207_v19  ;;  %v1672_v19 = vld [vmem:[%s1432_s28 + $0xc0] sm:$0xff]  ;;  %615 = vadd.xlane.f32.xlu0 %v614_v14 }
  0x55   : > { %1102 = vmatprep.mubr.msk.f32.mxu0 %vm230_vm0, %v208_v20  ;;  %v1675_v20 = vld [vmem:[%s1432_s28 + $0xd8] sm:$0xff]  ;;  %618 = vadd.xlane.f32.xlu1 %v617_v15 }
  0x58   : > { %1103 = vmatmul.mubr.msk.f32.gmra.mrb[14].mxu0 %vm230_vm0, %v209_v21  ;;  %v1678_v21 = vld [vmem:[%s1432_s28 + $0xd0] sm:$0xff] }
  0x59   : > { %1105 = vmatprep.mubr.msk.f32.mxu0 %vm230_vm0, %v210_v22 }
  0x5c   : > { %1106 = vmatmul.mubr.msk.f32.gmra.mrb[16].mxu0 %vm230_vm0, %v211_v23  ;;  %v620_v23 = vadd.f32 %v1669_v17, %v1672_v19 }
  0x5d   : > { %1108 = vmatprep.mubr.msk.f32.mxu0 %vm230_vm0, %v212_v24  ;;  %v623_v24 = vadd.f32 %v1675_v20, %v1678_v21 }
  0x5e   : > { %621 = vadd.xlane.f32.xlu0 %v620_v23 }
  0x5f   : > { %624 = vadd.xlane.f32.xlu1 %v623_v24 }
  0x60   : > { %1109 = vmatmul.mubr.msk.f32.gmra.mrb[18].mxu0 %vm230_vm0, %v213_v25 }
  0x61   : > { %1111 = vmatprep.mubr.msk.f32.mxu0 %vm230_vm0, %v214_v26  ;;  %v1685_v26 = vld [vmem:[%s1432_s28 + $0xe8] sm:$0xff] }
  0x64   : > { %1112 = vmatmul.mubr.msk.f32.gmra.mrb[20].mxu0 %vm230_vm0, %v215_v27 }
  0x65   : > { %1114 = vmatprep.mubr.msk.f32.mxu0 %vm230_vm0, %v216_v28  ;;  %v1688_v28 = vld [vmem:[%s1432_s28 + $0xe0] sm:$0xff] }
  0x68   : > { %1115 = vmatmul.mubr.msk.f32.gmra.mrb[22].mxu0 %vm230_vm0, %v217_v29  ;;  %v1691_v29 = vld [vmem:[%s1432_s28 + $0xf8] sm:$0xff] }
  0x69   : > { %1117 = vmatprep.mubr.msk.f32.mxu0 %vm230_vm0, %v218_v30  ;;  %v1694_v30 = vld [vmem:[%s1432_s28 + $0xf0] sm:$0xff]  ;;  %s919_s28 = sshll.u32 %s909_s16, 4 }
  0x6a   : > { %p189_p7 = scmp.lt.s32.totalorder %s919_s28, 31 }
  0x6c   : > { %1118 = vmatmul.mubr.msk.f32.gmra.mrb[24].mxu0 %vm230_vm0, %v219_v31  ;;  %s1794_s28 = smov (!%p189_p7, %s919_s28), 31 }
  0x6d   : > { %1120 = vmatprep.mubr.msk.f32.mxu0 %vm230_vm0, %v220_v32  ;;  %v626_v32 = vadd.f32 %v1685_v26, %v1688_v28  ;;  %s920_s12 = sshll.u32 %s1794_s28, 3 }
  0x6e   : > { %s1735_s18 = scalar_lea.vmem %s1785_s3, %s920_s12 }
  0x6f   : > { %627 = vadd.xlane.f32.xlu0 %v626_v32 }
  0x70   : > { %1121 = vmatmul.mubr.msk.f32.gmra.mrb[26].mxu0 %vm230_vm0, %v221_v33  ;;  %v629_v33 = vadd.f32 %v1691_v29, %v1694_v30 }
  0x71   : > { %1123 = vmatprep.mubr.msk.f32.mxu0 %vm230_vm0, %v222_v34 }
  0x72   : > { %630 = vadd.xlane.f32.xlu1 %v629_v33 }
  0x74   : > { %1124 = vmatmul.mubr.msk.f32.gmra.mrb[28].mxu0 %vm230_vm0, %v223_v35 }
  0x75   : > { %1126 = vmatprep.mubr.msk.f32.mxu0 %vm230_vm0, %v224_v36 }
  0x78   : > { %1127 = vmatmul.mubr.msk.f32.gmra.mrb[30].mxu0 %vm230_vm0, %v225_v37 }
  0x79   : > { %696 = vmatprep.mubr.f32.mxu0 %v553_v39 }
 0x10f   : > { %v1083_v62 = vpop.f32.mrb[0].mxu0 }
 0x110   : > { %v393_v0 = vpop.f32.mrb[1].mxu0 }
 0x111   : > { %v1139_v4 = vpack.c.bf16 %v1083_v62, %v393_v0 }
 0x113   : > { %v1086_v7 = vpop.f32.mrb[2].mxu0 }
 0x114   : > { %v403_v9 = vpop.f32.mrb[3].mxu0 }
 0x115   : > { %v1143_v13 = vpack.c.bf16 %v1086_v7, %v403_v9 }
 0x117   : > { %v1089_v16 = vpop.f32.mrb[4].mxu0 }
 0x118   : > { %v413_v18 = vpop.f32.mrb[5].mxu0 }
 0x119   : > { %v1147_v22 = vpack.c.bf16 %v1089_v16, %v413_v18 }
 0x11b   : > { %v1092_v25 = vpop.f32.mrb[6].mxu0 }
 0x11c   : > { %v423_v27 = vpop.f32.mrb[7].mxu0 }
 0x11d   : > { %v1151_v31 = vpack.c.bf16 %v1092_v25, %v423_v27 }
 0x11f   : > { %v1095_v34 = vpop.f32.mrb[8].mxu0 }
 0x120   : > { %v433_v35 = vpop.f32.mrb[9].mxu0 }
 0x121   : > { %v1155_v36 = vpack.c.bf16 %v1095_v34, %v433_v35 }
 0x123   : > { %v1098_v37 = vpop.f32.mrb[10].mxu0 }
 0x124   : > { %v443_v38 = vpop.f32.mrb[11].mxu0 }
 0x125   : > { %v1159_v39 = vpack.c.bf16 %v1098_v37, %v443_v38 }
 0x127   : > { %v1101_v43 = vpop.f32.mrb[12].mxu0 }
 0x128   : > { %v453_v44 = vpop.f32.mrb[13].mxu0 }
 0x129   : > { %v1163_v48 = vpack.c.bf16 %v1101_v43, %v453_v44 }
 0x12b   : > { %v1104_v49 = vpop.f32.mrb[14].mxu0 }
 0x12c   : > { %v463_v54 = vpop.f32.mrb[15].mxu0 }
 0x12d   : > { %v1167_v55 = vpack.c.bf16 %v1104_v49, %v463_v54 }
 0x12f   : > { %v1107_v60 = vpop.f32.mrb[16].mxu0 }
 0x130   : > { %v473_v61 = vpop.f32.mrb[17].mxu0 }
 0x131   : > { %v1137_v62 = vpack.c.bf16 %v1107_v60, %v473_v61 }
 0x133   : > { %v1110_v0 = vpop.f32.mrb[18].mxu0  ;;  %1138 = vmatprep.subr.bf16.mxu0 %v1137_v62  ;;  %1169 = vmatprep.subr.bf16.mxu1 %v1137_v62 }
 0x134   : > { %v483_v5 = vpop.f32.mrb[19].mxu0  ;;  %1140 = vmatpush3.bf16.msra.mxu0 %v1139_v4  ;;  %1177 = vmatpush3.bf16.msra.mxu1 %v1139_v4 }
 0x135   : > { %v1141_v6 = vpack.c.bf16 %v1110_v0, %v483_v5 }
 0x137   : > { %v1113_v7 = vpop.f32.mrb[20].mxu0  ;;  %1142 = vmatprep.subr.bf16.mxu0 %v1141_v6  ;;  %1170 = vmatprep.subr.bf16.mxu1 %v1141_v6 }
 0x138   : > { %v493_v9 = vpop.f32.mrb[21].mxu0  ;;  %1144 = vmatpush3.bf16.msra.mxu0 %v1143_v13  ;;  %1178 = vmatpush3.bf16.msra.mxu1 %v1143_v13 }
 0x139   : > { %v1145_v14 = vpack.c.bf16 %v1113_v7, %v493_v9 }
 0x13b   : > { %v1116_v15 = vpop.f32.mrb[22].mxu0  ;;  %1146 = vmatprep.subr.bf16.mxu0 %v1145_v14  ;;  %1171 = vmatprep.subr.bf16.mxu1 %v1145_v14 }
 0x13c   : > { %v503_v16 = vpop.f32.mrb[23].mxu0  ;;  %1148 = vmatpush3.bf16.msra.mxu0 %v1147_v22  ;;  %1179 = vmatpush3.bf16.msra.mxu1 %v1147_v22 }
 0x13d   : > { %v1149_v18 = vpack.c.bf16 %v1116_v15, %v503_v16 }
 0x13f   : > { %v1119_v23 = vpop.f32.mrb[24].mxu0  ;;  %1150 = vmatprep.subr.bf16.mxu0 %v1149_v18  ;;  %1172 = vmatprep.subr.bf16.mxu1 %v1149_v18 }
 0x140   : > { %v513_v24 = vpop.f32.mrb[25].mxu0  ;;  %1152 = vmatpush3.bf16.msra.mxu0 %v1151_v31  ;;  %1180 = vmatpush3.bf16.msra.mxu1 %v1151_v31 }
 0x141   : > { %v1153_v4 = vpack.c.bf16 %v1119_v23, %v513_v24 }
 0x143   : > { %v1122_v25 = vpop.f32.mrb[26].mxu0  ;;  %1154 = vmatprep.subr.bf16.mxu0 %v1153_v4  ;;  %1173 = vmatprep.subr.bf16.mxu1 %v1153_v4 }
 0x144   : > { %v523_v27 = vpop.f32.mrb[27].mxu0  ;;  %1156 = vmatpush3.bf16.msra.mxu0 %v1155_v36  ;;  %1181 = vmatpush3.bf16.msra.mxu1 %v1155_v36 }
 0x145   : > { %v1157_v13 = vpack.c.bf16 %v1122_v25, %v523_v27 }
 0x147   : > { %v1125_v32 = vpop.f32.mrb[28].mxu0  ;;  %1158 = vmatprep.subr.bf16.mxu0 %v1157_v13  ;;  %1174 = vmatprep.subr.bf16.mxu1 %v1157_v13 }
 0x148   : > { %v533_v33 = vpop.f32.mrb[29].mxu0  ;;  %1160 = vmatpush3.bf16.msra.mxu0 %v1159_v39  ;;  %1182 = vmatpush3.bf16.msra.mxu1 %v1159_v39 }
 0x149   : > { %v1161_v22 = vpack.c.bf16 %v1125_v32, %v533_v33 }
 0x14b   : > { %v1128_v34 = vpop.f32.mrb[30].mxu0  ;;  %1162 = vmatprep.subr.bf16.mxu0 %v1161_v22  ;;  %1175 = vmatprep.subr.bf16.mxu1 %v1161_v22 }
 0x14c   : > { %v543_v35 = vpop.f32.mrb[31].mxu0  ;;  %1164 = vmatpush3.bf16.msra.mxu0 %v1163_v48  ;;  %1183 = vmatpush3.bf16.msra.mxu1 %v1163_v48 }
 0x14d   : > { %v1165_v31 = vpack.c.bf16 %v1128_v34, %v543_v35 }
 0x14f   : > { %1166 = vmatprep.subr.bf16.mxu0 %v1165_v31  ;;  %1176 = vmatprep.subr.bf16.mxu1 %v1165_v31 }
 0x150   : > { %1168 = vmatpush3.bf16.msra.mxu0 %v1167_v55  ;;  %1184 = vmatpush3.bf16.msra.mxu1 %v1167_v55 }
 0x153   : > { %712 = vmatmul.mubr.f32.vlgmr.msra.gmra.mrb[0].mxu1 %v1593_v45  ;;  %697 = vmatmul.mubr.f32.vlgmr.msra.gmra.mrb[32].mxu0 %v1581_v40  ;;  %v586_v40 = vpop.xlane.xlu0 %585 }
 0x154   : > { %716 = vmatprep.mubr.f32.mxu1 %v1605_v50  ;;  %701 = vmatprep.mubr.f32.mxu0 %v1596_v46  ;;  %1226 = vrcp.f32 %v586_v40 }
 0x157   : > { %717 = vmatmul.mubr.f32.gmra.mrb[2].mxu1 %v1608_v51  ;;  %702 = vmatmul.mubr.f32.gmra.mrb[34].mxu0 %v1599_v47 }
 0x158   : > { %721 = vmatprep.mubr.f32.mxu1 %v1611_v52  ;;  %706 = vmatprep.mubr.f32.mxu0 %v1584_v41  ;;  %v592_v41 = vpop.xlane.xlu1 %591 }
 0x15b   : > { %722 = vmatmul.mubr.f32.gmra.mrb[4].mxu1 %v1614_v53  ;;  %707 = vmatmul.mubr.f32.gmra.mrb[36].mxu0 %v1587_v42  ;;  %v589_v42 = vpop.xlane.xlu0 %588 }
 0x15c   : > { %726 = vmatprep.mubr.f32.mxu1 %v1621_v56  ;;  %v595_v45 = vpop.xlane.xlu1 %594 }
 0x15d   : > { %1228 = vrcp.f32 %v595_v45 }
 0x15e   : > { %1230 = vrcp.f32 %v589_v42  ;;  %v1227_v51 = vpop.eup %1226 }
 0x15f   : > { %727 = vmatmul.mubr.f32.gmra.mrb[6].mxu1 %v1624_v57  ;;  %v598_v46 = vpop.xlane.xlu0 %597 }
 0x160   : > { %731 = vmatprep.mubr.f32.mxu1 %v1627_v58  ;;  %1232 = vrcp.f32 %v598_v46  ;;  %v601_v47 = vpop.xlane.xlu1 %600 }
 0x161   : > { %1234 = vrcp.f32 %v592_v41 }
 0x162   : > { %1236 = vrcp.f32 %v601_v47 }
 0x163   : > { %732 = vmatmul.mubr.f32.gmra.mrb[8].mxu1 %v1630_v59  ;;  %v604_v50 = vpop.xlane.xlu0 %603 }
 0x164   : > { %736 = vmatprep.mubr.f32.mxu1 %v1637_v63  ;;  %1238 = vrcp.f32 %v604_v50 }
 0x167   : > { %737 = vmatmul.mubr.f32.gmra.mrb[10].mxu1 %v1640_v1  ;;  %v1229_v56 = vpop.eup %1228  ;;  %v607_v1 = vpop.xlane.xlu1 %606 }
 0x168   : > { %741 = vmatprep.mubr.f32.mxu1 %v1643_v2  ;;  %v1231_v2 = vpop.eup %1230  ;;  %1240 = vrcp.f32 %v607_v1 }
 0x16b   : > { %742 = vmatmul.mubr.f32.gmra.mrb[12].mxu1 %v1646_v3  ;;  %v613_v0 = vpop.xlane.xlu1 %612 }
 0x16c   : > { %746 = vmatprep.mubr.f32.mxu1 %v1653_v8 }
 0x16f   : > { %747 = vmatmul.mubr.f32.gmra.mrb[14].mxu1 %v1656_v10  ;;  %v619_v33 = vpop.xlane.xlu1 %618 }
 0x170   : > { %751 = vmatprep.mubr.f32.mxu1 %v1659_v11 }
 0x173   : > { %752 = vmatmul.mubr.f32.gmra.mrb[16].mxu1 %v1662_v12  ;;  %v1233_v12 = vpop.eup %1232 }
 0x174   : > { %756 = vmatprep.mubr.f32.mxu1 %v1669_v17 }
 0x177   : > { %757 = vmatmul.mubr.f32.gmra.mrb[18].mxu1 %v1672_v19 }
 0x178   : > { %761 = vmatprep.mubr.f32.mxu1 %v1675_v20 }
 0x17b   : > { %762 = vmatmul.mubr.f32.gmra.mrb[20].mxu1 %v1678_v21 }
 0x17c   : > { %766 = vmatprep.mubr.f32.mxu1 %v1685_v26 }
 0x17f   : > { %767 = vmatmul.mubr.f32.gmra.mrb[22].mxu1 %v1688_v28 }
 0x180   : > { %771 = vmatprep.mubr.f32.mxu1 %v1691_v29  ;;  %v610_v29 = vpop.xlane.xlu0 %609 }
 0x181   : > { %1242 = vrcp.f32 %v610_v29 }
 0x182   : > { %1244 = vrcp.f32 %v613_v0 }
 0x183   : > { %772 = vmatmul.mubr.f32.gmra.mrb[24].mxu1 %v1694_v30  ;;  %v1235_v30 = vpop.eup %1234 }
 0x184   : > { %v1237_v43 = vpop.eup %1236  ;;  %v616_v23 = vpop.xlane.xlu0 %615 }
 0x185   : > { %v1239_v6 = vpop.eup %1238  ;;  %1246 = vrcp.f32 %v616_v23 }
 0x186   : > { %v1241_v24 = vpop.eup %1240  ;;  %1248 = vrcp.f32 %v619_v33 }
 0x188   : > { %v622_v42 = vpop.xlane.xlu0 %621 }
 0x189   : > { %1250 = vrcp.f32 %v622_v42 }
 0x18b   : > { %v1243_v22 = vpop.eup %1242 }
 0x18c   : > { %v1245_v45 = vpop.eup %1244 }
 0x226   : > { %v1034_v52 = vpop.f32.mrb[0].mxu1  ;;  %v1025_v53 = vpop.f32.mrb[32].mxu0 }
 0x227   : > { %v1035_v57 = vpop.f32.mrb[1].mxu1  ;;  %v1026_v58 = vpop.f32.mrb[33].mxu0 }
 0x228   : > { %v1036_v59 = vadd.f32 %v1035_v57, %v1034_v52  ;;  %v1027_v63 = vadd.f32 %v1026_v58, %v1025_v53  ;;  %v625_v53 = vpop.xlane.xlu1 %624 }
 0x229   : > { %1252 = vrcp.f32 %v625_v53 }
 0x22a   : > { %v796_v3 = vmul.f32 %v1229_v56, %v1036_v59  ;;  %v1037_v8 = vpop.f32.mrb[2].mxu1  ;;  %v793_v10 = vmul.f32 %v1227_v51, %v1027_v63  ;;  %v1028_v11 = vpop.f32.mrb[34].mxu0 }
 0x22b   : > { %v1038_v17 = vpop.f32.mrb[3].mxu1  ;;  %v1029_v19 = vpop.f32.mrb[35].mxu0 }
 0x22c   : > { %v812_v20 = vmax.f32 %v796_v3, 0.0  ;;  %v1039_v21 = vadd.f32 %v1038_v17, %v1037_v8  ;;  %v809_v26 = vmax.f32 %v793_v10, 0.0  ;;  %v1030_v28 = vadd.f32 %v1029_v19, %v1028_v11  ;;  %v1247_v56 = vpop.eup %1246  ;;  %v631_v19 = vpop.xlane.xlu1 %630 }
 0x22d   : > { %v1249_v3 = vpop.eup %1248 }
 0x22e   : > { %829 = vst.msk [vmem:[%s1735_s18 + $0x18] sm:$0xff] %vm825_vm1, %v812_v20  ;;  %v797_v36 = vmul.f32 %v1233_v12, %v1039_v21  ;;  %v1040_v37 = vpop.f32.mrb[4].mxu1  ;;  %826 = vst.msk [vmem:[%s1735_s18] sm:$0xff] %vm825_vm1, %v809_v26  ;;  %v794_v38 = vmul.f32 %v1231_v2, %v1030_v28  ;;  %v1031_v39 = vpop.f32.mrb[36].mxu0 }
 0x22f   : > { %v1041_v44 = vpop.f32.mrb[5].mxu1  ;;  %v1032_v48 = vpop.f32.mrb[37].mxu0 }
 0x230   : > { %v813_v49 = vmax.f32 %v797_v36, 0.0  ;;  %v1042_v54 = vadd.f32 %v1041_v44, %v1040_v37  ;;  %v810_v55 = vmax.f32 %v794_v38, 0.0  ;;  %v1033_v60 = vadd.f32 %v1032_v48, %v1031_v39  ;;  %v628_v2 = vpop.xlane.xlu0 %627  ;;  %v1251_v20 = vpop.eup %1250 }
 0x231   : > { %1254 = vrcp.f32 %v628_v2 }
 0x232   : > { %830 = vst.msk [vmem:[%s1735_s18 + $0x20] sm:$0xff] %vm825_vm1, %v813_v49  ;;  %v798_v61 = vmul.f32 %v1237_v43, %v1042_v54  ;;  %v1043_v62 = vpop.f32.mrb[6].mxu1  ;;  %827 = vst.msk [vmem:[%s1735_s18 + $0x8] sm:$0xff] %vm825_vm1, %v810_v55  ;;  %v795_v5 = vmul.f32 %v1235_v30, %v1033_v60  ;;  %1256 = vrcp.f32 %v631_v19 }
 0x233   : > { %v1044_v7 = vpop.f32.mrb[7].mxu1  ;;  %v1253_v36 = vpop.eup %1252 }
 0x234   : > { %v814_v9 = vmax.f32 %v798_v61, 0.0  ;;  %v1045_v14 = vadd.f32 %v1044_v7, %v1043_v62  ;;  %v811_v15 = vmax.f32 %v795_v5, 0.0 }
 0x236   : > { %831 = vst.msk [vmem:[%s1735_s18 + $0x28] sm:$0xff] %vm825_vm1, %v814_v9  ;;  %v799_v16 = vmul.f32 %v1239_v6, %v1045_v14  ;;  %v1046_v18 = vpop.f32.mrb[8].mxu1  ;;  %828 = vst.msk [vmem:[%s1735_s18 + $0x10] sm:$0xff] %vm825_vm1, %v811_v15 }
 0x237   : > { %v1047_v4 = vpop.f32.mrb[9].mxu1 }
 0x238   : > { %v815_v25 = vmax.f32 %v799_v16, 0.0  ;;  %v1048_v27 = vadd.f32 %v1047_v4, %v1046_v18 }
 0x23a   : > { %832 = vst.msk [vmem:[%s1735_s18 + $0x30] sm:$0xff] %vm825_vm1, %v815_v25  ;;  %v800_v13 = vmul.f32 %v1241_v24, %v1048_v27  ;;  %v1049_v32 = vpop.f32.mrb[10].mxu1 }
 0x23b   : > { %v1050_v34 = vpop.f32.mrb[11].mxu1  ;;  %v1255_v48 = vpop.eup %1254 }
 0x23c   : > { %v816_v35 = vmax.f32 %v800_v13, 0.0  ;;  %v1051_v31 = vadd.f32 %v1050_v34, %v1049_v32  ;;  %v1257_v62 = vpop.eup %1256 }
 0x23e   : > { %833 = vst.msk [vmem:[%s1735_s18 + $0x38] sm:$0xff] %vm825_vm1, %v816_v35  ;;  %v801_v40 = vmul.f32 %v1243_v22, %v1051_v31  ;;  %v1052_v41 = vpop.f32.mrb[12].mxu1 }
 0x23f   : > { %v1053_v46 = vpop.f32.mrb[13].mxu1 }
 0x240   : > { %v817_v47 = vmax.f32 %v801_v40, 0.0  ;;  %v1054_v50 = vadd.f32 %v1053_v46, %v1052_v41 }
 0x242   : > { %834 = vst.msk [vmem:[%s1735_s18 + $0x40] sm:$0xff] %vm825_vm1, %v817_v47  ;;  %v802_v51 = vmul.f32 %v1245_v45, %v1054_v50  ;;  %v1055_v52 = vpop.f32.mrb[14].mxu1 }
 0x243   : > { %v1056_v57 = vpop.f32.mrb[15].mxu1 }
 0x244   : > { %v818_v58 = vmax.f32 %v802_v51, 0.0  ;;  %v1057_v59 = vadd.f32 %v1056_v57, %v1055_v52 }
 0x246   : > { %835 = vst.msk [vmem:[%s1735_s18 + $0x48] sm:$0xff] %vm825_vm1, %v818_v58  ;;  %v803_v63 = vmul.f32 %v1247_v56, %v1057_v59  ;;  %v1058_v1 = vpop.f32.mrb[16].mxu1 }
 0x247   : > { %v1059_v8 = vpop.f32.mrb[17].mxu1 }
 0x248   : > { %v819_v10 = vmax.f32 %v803_v63, 0.0  ;;  %v1060_v11 = vadd.f32 %v1059_v8, %v1058_v1 }
 0x24a   : > { %836 = vst.msk [vmem:[%s1735_s18 + $0x50] sm:$0xff] %vm825_vm1, %v819_v10  ;;  %v804_v12 = vmul.f32 %v1249_v3, %v1060_v11  ;;  %v1061_v17 = vpop.f32.mrb[18].mxu1 }
 0x24b   : > { %v1062_v21 = vpop.f32.mrb[19].mxu1 }
 0x24c   : > { %v820_v26 = vmax.f32 %v804_v12, 0.0  ;;  %v1063_v28 = vadd.f32 %v1062_v21, %v1061_v17 }
 0x24e   : > { %837 = vst.msk [vmem:[%s1735_s18 + $0x58] sm:$0xff] %vm825_vm1, %v820_v26  ;;  %v805_v29 = vmul.f32 %v1251_v20, %v1063_v28  ;;  %v1064_v30 = vpop.f32.mrb[20].mxu1 }
 0x24f   : > { %v1065_v37 = vpop.f32.mrb[21].mxu1 }
 0x250   : > { %v821_v38 = vmax.f32 %v805_v29, 0.0  ;;  %v1066_v39 = vadd.f32 %v1065_v37, %v1064_v30 }
 0x252   : > { %838 = vst.msk [vmem:[%s1735_s18 + $0x60] sm:$0xff] %vm825_vm1, %v821_v38  ;;  %v806_v43 = vmul.f32 %v1253_v36, %v1066_v39  ;;  %v1067_v44 = vpop.f32.mrb[22].mxu1 }
 0x253   : > { %v1068_v49 = vpop.f32.mrb[23].mxu1 }
 0x254   : > { %v822_v54 = vmax.f32 %v806_v43, 0.0  ;;  %v1069_v55 = vadd.f32 %v1068_v49, %v1067_v44 }
 0x256   : > { %839 = vst.msk [vmem:[%s1735_s18 + $0x68] sm:$0xff] %vm825_vm1, %v822_v54  ;;  %v807_v60 = vmul.f32 %v1255_v48, %v1069_v55  ;;  %v1070_v61 = vpop.f32.mrb[24].mxu1 }
 0x257   : > { %v1071_v0 = vpop.f32.mrb[25].mxu1 }
 0x258   : > { %v823_v5 = vmax.f32 %v807_v60, 0.0  ;;  %v1072_v6 = vadd.f32 %v1071_v0, %v1070_v61 }
 0x25a   : > { %840 = vst.msk [vmem:[%s1735_s18 + $0x70] sm:$0xff] %vm825_vm1, %v823_v5  ;;  %v808_v7 = vmul.f32 %v1257_v62, %v1072_v6 }
 0x25c   : > { %v824_v9 = vmax.f32 %v808_v7, 0.0 }
 0x25e   : > { %841 = vst.msk [vmem:[%s1735_s18 + $0x78] sm:$0xff] %vm825_vm1, %v824_v9 }
 0x25f PF: > { %p13_p8 = scmp.ge.s32.totalorder %s1367_s17, 4   ;;  %s1789_s12 = smov %s1314_s13 }
 0x260   : > { %s1790_s13 = smov %s1318_s14  ;;  %s1791_s14 = smov %s1377_s20 }
 0x261   : > { %s1792_s15 = smov %s1367_s17  ;;  %15 = sbr.rel (!%p13_p8) target bundleno = 3 (0x3), region = 72 }
 0x268   :  { %864 = vsyncpa [#allocation3], 1 }
 0x269   :  { %866 = vsyncpa [#allocation3 + $0x1], 1 }

</bundles_post_ra>
